<compile_context>
chip_gen: v7x
topology: tpu7x:2x2x1
jax: 0.10.0
libtpu: 0.0.40
codegen_flags: <defaults>
</compile_context>

<pallas_src>
import jax
import jax.numpy as jnp
from jax.experimental import pallas as pl
from jax.experimental.pallas import tpu as pltpu


# ----------------------------- Pallas kernel --------------------------------
def _cppn_kernel(x_ref, w0_ref, b0_ref, w1_ref, b1_ref, w2_ref, b2_ref,
                 wo_ref, bo_ref, o_ref):
    # x_ref: (3, tm) coordinate tile, feature-major. Weights are (out, in), bf16.
    x = x_ref[...].astype(jnp.bfloat16)

    # Layer 0: Linear(3+z_dim -> H0, bias=False) + tanh.
    # The z @ W0[:, 3:] contribution is pre-folded into b0 (exact: z is
    # identical for every pixel).
    h = jnp.dot(w0_ref[...], x, preferred_element_type=jnp.float32) + b0_ref[...]
    h = jnp.tanh(h)

    # Layer 1: Linear(H0 -> H1) + tanh
    h = jnp.dot(w1_ref[...], h.astype(jnp.bfloat16),
                preferred_element_type=jnp.float32) + b1_ref[...]
    h = jnp.tanh(h)

    # Layer 2: Linear(H1 -> H2) + tanh
    h = jnp.dot(w2_ref[...], h.astype(jnp.bfloat16),
                preferred_element_type=jnp.float32) + b2_ref[...]
    h = jnp.tanh(h)

    # Output: Linear(H2 -> C) + sigmoid (exp on EUP + approx reciprocal).
    h = jnp.dot(wo_ref[...], h.astype(jnp.bfloat16),
                preferred_element_type=jnp.float32) + bo_ref[...]
    o_ref[...] = pl.reciprocal(1.0 + jnp.exp(-h), approx=True)


# ------------------------------- wrapper -------------------------------------
def cppn_forward(coords, z, params, *, tm=2048):
    """coords: (N, 3) f32; z: (z_dim,) f32; params in PyTorch (out, in) layout.

    Returns (N, C) f32, pixel-major (same ordering as the torch Sequential).
    """
    N = coords.shape[0]
    w0, w1, b1 = params["w0"], params["w1"], params["b1"]
    w2, b2 = params["w2"], params["b2"]
    wo, bo = params["wo"], params["bo"]
    H0 = w0.shape[0]
    C = wo.shape[0]

    # Tile size: multiple of 128 (lane dim), no larger than the padded N.
    tm = max(128, (int(tm) // 128) * 128)
    tm = min(tm, pl.cdiv(N, 128) * 128)
    n_pad = pl.cdiv(N, tm) * tm

    # Feature-major streamed input: (3, n_pad). Padding rows are zeros; their
    # outputs are computed and sliced away below.
    x_t = jnp.pad(coords.astype(jnp.float32), ((0, n_pad - N), (0, 0))).T

    # Fold the constant z into the layer-0 bias (layer 0 has no bias in torch).
    b0 = (w0[:, 3:] @ z).reshape(H0, 1).astype(jnp.float32)

    # Resident weights in bf16 (MXU-native); biases stay f32, shaped (H, 1).
    w0b = w0[:, :3].astype(jnp.bfloat16)
    w1b = w1.astype(jnp.bfloat16)
    w2b = w2.astype(jnp.bfloat16)
    wob = wo.astype(jnp.bfloat16)
    b1c = b1.reshape(-1, 1).astype(jnp.float32)
    b2c = b2.reshape(-1, 1).astype(jnp.float32)
    boc = bo.reshape(-1, 1).astype(jnp.float32)

    def resident(arr):
        nd = arr.ndim
        # Full-array block, same block every grid step (stays resident in VMEM).
        return pl.BlockSpec(arr.shape, lambda i: (0,) * nd)

    grid = (n_pad // tm,)
    out_t = pl.pallas_call(
        _cppn_kernel,
        out_shape=jax.ShapeDtypeStruct((C, n_pad), jnp.float32),
        grid_spec=pltpu.PrefetchScalarGridSpec(
            num_scalar_prefetch=0,
            grid=grid,
            in_specs=[
                pl.BlockSpec((3, tm), lambda i: (0, i)),   # streamed coords
                resident(w0b), resident(b0),
                resident(w1b), resident(b1c),
                resident(w2b), resident(b2c),
                resident(wob), resident(boc),
            ],
            out_specs=pl.BlockSpec((C, tm), lambda i: (0, i)),
        ),
        compiler_params=pltpu.CompilerParams(
            dimension_semantics=("parallel",)),
    )(x_t, w0b, b0, w1b, b1c, w2b, b2c, wob, boc)

    return out_t[:, :N].T  # (N, C) pixel-major


# ------------------------------ glue (plain JAX) -----------------------------
def generate_coordinates(resolution, z_scale):
    # Matches CPPN.generate_coordinates: columns [yy, xx, r].
    y = jnp.linspace(-z_scale, z_scale, resolution[0])
    x = jnp.linspace(-z_scale, z_scale, resolution[1])
    xx, yy = jnp.meshgrid(x, y)
    coords = jnp.stack([yy.flatten(), xx.flatten()], axis=1)
    r = jnp.linalg.norm(coords, axis=1, keepdims=True)
    return jnp.concatenate([coords, r], axis=1).astype(jnp.float32)


def init_params(key, z_dim, layer_sizes, rgb, stddev):
    # PyTorch nn.Linear convention: weight is (out, in), forward = x @ W.T + b.
    h0, h1, h2 = layer_sizes
    c = 3 if rgb else 1
    ks = jax.random.split(key, 7)
    return {
        "w0": stddev * jax.random.normal(ks[0], (h0, 3 + z_dim), jnp.float32),
        "w1": stddev * jax.random.normal(ks[1], (h1, h0), jnp.float32),
        "b1": stddev * jax.random.normal(ks[2], (h1,), jnp.float32),
        "w2": stddev * jax.random.normal(ks[3], (h2, h1), jnp.float32),
        "b2": stddev * jax.random.normal(ks[4], (h2,), jnp.float32),
        "wo": stddev * jax.random.normal(ks[5], (c, h2), jnp.float32),
        "bo": stddev * jax.random.normal(ks[6], (c,), jnp.float32),
    }


def reference_forward(coords, z, params):
    # Plain-JAX reference that mirrors the kernel's numerics exactly
    # (z folded into the layer-0 bias, bf16 matmul operands with f32
    # accumulation); the only remaining delta is the approx reciprocal sigmoid.
    def bdot(a, b):
        return jnp.dot(a.astype(jnp.bfloat16), b.astype(jnp.bfloat16),
                       preferred_element_type=jnp.float32)

    w0 = params["w0"]
    b0 = (w0[:, 3:] @ z)[None, :]
    h = jnp.tanh(bdot(coords, w0[:, :3].T) + b0)
    h = jnp.tanh(bdot(h, params["w1"].T) + params["b1"][None, :])
    h = jnp.tanh(bdot(h, params["w2"].T) + params["b2"][None, :])
    logits = bdot(h, params["wo"].T) + params["bo"][None, :]
    return jax.nn.sigmoid(logits)


if __name__ == "__main__":
    # Small config consistent with the module.
    resolution = (16, 16)          # -> N = 256 pixels
    rgb = True
    z_dim = 8
    z_scale = 1.0
    n_layers = 3
    layer_sizes = [32, 32, 32]
    stddev = 1.0                   # initialization = {'type': 'normal', 'stddev': 1.0}

    key = jax.random.PRNGKey(0)
    k_param, k_z = jax.random.split(key)
    params = init_params(k_param, z_dim, layer_sizes, rgb, stddev)

    coords = generate_coordinates(resolution, z_scale)                 # (N, 3)
    z_vec = jax.random.uniform(k_z, (z_dim,), jnp.float32,
                               minval=-z_scale, maxval=z_scale)

    pixels_flat = cppn_forward(coords, z_vec, params, tm=2048)         # (N, 3)
    pixels = pixels_flat.reshape(resolution[0], resolution[1], 3 if rgb else 1)
    pixels = jax.block_until_ready(pixels)

    # Sanity check vs. the numerics-matched plain-JAX reference. Tolerance
    # covers the approx (EUP) reciprocal in the kernel's sigmoid.
    ref = reference_forward(coords, z_vec, params).reshape(pixels.shape)
    assert pixels.shape == ref.shape
    assert jnp.allclose(pixels, ref, atol=2e-2, rtol=0), \
        float(jnp.max(jnp.abs(pixels - ref)))

    print("KERNEL_OK")
</pallas_src>

<mosaic_0001>
module attributes {stable_mosaic.version = 11 : i64} {
  func.func @_cppn_kernel(%arg0: i32, %arg1: memref<3x256xf32, #tpu.memory_space<vmem>>, %arg2: memref<32x3xbf16, #tpu.memory_space<vmem>>, %arg3: memref<32x1xf32, #tpu.memory_space<vmem>>, %arg4: memref<32x32xbf16, #tpu.memory_space<vmem>>, %arg5: memref<32x1xf32, #tpu.memory_space<vmem>>, %arg6: memref<32x32xbf16, #tpu.memory_space<vmem>>, %arg7: memref<32x1xf32, #tpu.memory_space<vmem>>, %arg8: memref<3x32xbf16, #tpu.memory_space<vmem>>, %arg9: memref<3x1xf32, #tpu.memory_space<vmem>>, %arg10: memref<3x256xf32, #tpu.memory_space<vmem>>) attributes {dimension_semantics = [#tpu.dimension_semantics<parallel>], iteration_bounds = array<i64: 1>, scalar_prefetch = 0 : i64, scratch_operands = 0 : i64, tpu.core_type = #tpu.core_type<tc>, window_params = [{transform_indices = @transform_0, window_bounds = array<i64: 3, 256>}, {pipeline_mode = #tpu.pipeline_mode<synchronous>, transform_indices = @transform_1, window_bounds = array<i64: 32, 3>}, {pipeline_mode = #tpu.pipeline_mode<synchronous>, transform_indices = @transform_2, window_bounds = array<i64: 32, 1>}, {pipeline_mode = #tpu.pipeline_mode<synchronous>, transform_indices = @transform_3, window_bounds = array<i64: 32, 32>}, {pipeline_mode = #tpu.pipeline_mode<synchronous>, transform_indices = @transform_4, window_bounds = array<i64: 32, 1>}, {pipeline_mode = #tpu.pipeline_mode<synchronous>, transform_indices = @transform_5, window_bounds = array<i64: 32, 32>}, {pipeline_mode = #tpu.pipeline_mode<synchronous>, transform_indices = @transform_6, window_bounds = array<i64: 32, 1>}, {pipeline_mode = #tpu.pipeline_mode<synchronous>, transform_indices = @transform_7, window_bounds = array<i64: 3, 32>}, {pipeline_mode = #tpu.pipeline_mode<synchronous>, transform_indices = @transform_8, window_bounds = array<i64: 3, 1>}, {transform_indices = @transform_9, window_bounds = array<i64: 3, 256>}]} {
    %c0 = arith.constant 0 : index
    %c0_0 = arith.constant 0 : index
    %0 = vector.load %arg1[%c0, %c0_0] : memref<3x256xf32, #tpu.memory_space<vmem>>, vector<3x256xf32>
    %1 = arith.truncf %0 : vector<3x256xf32> to vector<3x256xbf16>
    %c0_1 = arith.constant 0 : index
    %c0_2 = arith.constant 0 : index
    %2 = vector.load %arg2[%c0_1, %c0_2] : memref<32x3xbf16, #tpu.memory_space<vmem>>, vector<32x3xbf16>
    %cst = arith.constant dense<0.000000e+00> : vector<32x256xf32>
    %3 = tpu.matmul %2, %1, %cst {dimension_numbers = #tpu.dot_dimension_numbers<[1], [0], [0], [1], [0, 0, 1, 1], [], []>} : vector<32x3xbf16>, vector<3x256xbf16>, vector<32x256xf32> -> vector<32x256xf32>
    %c0_3 = arith.constant 0 : index
    %c0_4 = arith.constant 0 : index
    %4 = vector.load %arg3[%c0_3, %c0_4] : memref<32x1xf32, #tpu.memory_space<vmem>>, vector<32x1xf32>
    %5 = vector.broadcast %4 : vector<32x1xf32> to vector<32x256xf32>
    %6 = arith.addf %3, %5 : vector<32x256xf32>
    %7 = math.tanh %6 : vector<32x256xf32>
    %c0_5 = arith.constant 0 : index
    %c0_6 = arith.constant 0 : index
    %8 = vector.load %arg4[%c0_5, %c0_6] : memref<32x32xbf16, #tpu.memory_space<vmem>>, vector<32x32xbf16>
    %9 = arith.truncf %7 : vector<32x256xf32> to vector<32x256xbf16>
    %cst_7 = arith.constant dense<0.000000e+00> : vector<32x256xf32>
    %10 = tpu.matmul %8, %9, %cst_7 {dimension_numbers = #tpu.dot_dimension_numbers<[1], [0], [0], [1], [0, 0, 1, 1], [], []>} : vector<32x32xbf16>, vector<32x256xbf16>, vector<32x256xf32> -> vector<32x256xf32>
    %c0_8 = arith.constant 0 : index
    %c0_9 = arith.constant 0 : index
    %11 = vector.load %arg5[%c0_8, %c0_9] : memref<32x1xf32, #tpu.memory_space<vmem>>, vector<32x1xf32>
    %12 = vector.broadcast %11 : vector<32x1xf32> to vector<32x256xf32>
    %13 = arith.addf %10, %12 : vector<32x256xf32>
    %14 = math.tanh %13 : vector<32x256xf32>
    %c0_10 = arith.constant 0 : index
    %c0_11 = arith.constant 0 : index
    %15 = vector.load %arg6[%c0_10, %c0_11] : memref<32x32xbf16, #tpu.memory_space<vmem>>, vector<32x32xbf16>
    %16 = arith.truncf %14 : vector<32x256xf32> to vector<32x256xbf16>
    %cst_12 = arith.constant dense<0.000000e+00> : vector<32x256xf32>
    %17 = tpu.matmul %15, %16, %cst_12 {dimension_numbers = #tpu.dot_dimension_numbers<[1], [0], [0], [1], [0, 0, 1, 1], [], []>} : vector<32x32xbf16>, vector<32x256xbf16>, vector<32x256xf32> -> vector<32x256xf32>
    %c0_13 = arith.constant 0 : index
    %c0_14 = arith.constant 0 : index
    %18 = vector.load %arg7[%c0_13, %c0_14] : memref<32x1xf32, #tpu.memory_space<vmem>>, vector<32x1xf32>
    %19 = vector.broadcast %18 : vector<32x1xf32> to vector<32x256xf32>
    %20 = arith.addf %17, %19 : vector<32x256xf32>
    %21 = math.tanh %20 : vector<32x256xf32>
    %c0_15 = arith.constant 0 : index
    %c0_16 = arith.constant 0 : index
    %22 = vector.load %arg8[%c0_15, %c0_16] : memref<3x32xbf16, #tpu.memory_space<vmem>>, vector<3x32xbf16>
    %23 = arith.truncf %21 : vector<32x256xf32> to vector<32x256xbf16>
    %cst_17 = arith.constant dense<0.000000e+00> : vector<3x256xf32>
    %24 = tpu.matmul %22, %23, %cst_17 {dimension_numbers = #tpu.dot_dimension_numbers<[1], [0], [0], [1], [0, 0, 1, 1], [], []>} : vector<3x32xbf16>, vector<32x256xbf16>, vector<3x256xf32> -> vector<3x256xf32>
    %c0_18 = arith.constant 0 : index
    %c0_19 = arith.constant 0 : index
    %25 = vector.load %arg9[%c0_18, %c0_19] : memref<3x1xf32, #tpu.memory_space<vmem>>, vector<3x1xf32>
    %26 = vector.broadcast %25 : vector<3x1xf32> to vector<3x256xf32>
    %27 = arith.addf %24, %26 : vector<3x256xf32>
    %cst_20 = arith.constant 0.000000e+00 : f32
    %28 = vector.broadcast %cst_20 : f32 to vector<3x256xf32>
    %29 = arith.subf %28, %27 : vector<3x256xf32>
    %30 = math.exp %29 : vector<3x256xf32>
    %cst_21 = arith.constant 1.000000e+00 : f32
    %31 = vector.broadcast %cst_21 : f32 to vector<3x256xf32>
    %32 = arith.addf %31, %30 : vector<3x256xf32>
    %33 = tpu.reciprocal %32 {approx = true} : vector<3x256xf32> -> vector<3x256xf32>
    %c0_22 = arith.constant 0 : index
    %c0_23 = arith.constant 0 : index
    %34 = vector.load %arg10[%c0_22, %c0_23] : memref<3x256xf32, #tpu.memory_space<vmem>>, vector<3x256xf32>
    tpu.vector_store %arg10[%c0_22, %c0_23], %33 {strides = array<i32>} : memref<3x256xf32, #tpu.memory_space<vmem>>, vector<3x256xf32>,
    return
  }
  func.func @transform_0(%arg0: i32) -> (i32, i32) {
    %c0_i32 = arith.constant 0 : i32
    %c0_i32_0 = arith.constant 0 : i32
    return %c0_i32, %arg0 : i32, i32
  }
  func.func @transform_1(%arg0: i32) -> (i32, i32) {
    %c0_i32 = arith.constant 0 : i32
    %c0_i32_0 = arith.constant 0 : i32
    %c0_i32_1 = arith.constant 0 : i32
    return %c0_i32, %c0_i32_0 : i32, i32
  }
  func.func @transform_2(%arg0: i32) -> (i32, i32) {
    %c0_i32 = arith.constant 0 : i32
    %c0_i32_0 = arith.constant 0 : i32
    %c0_i32_1 = arith.constant 0 : i32
    return %c0_i32, %c0_i32_0 : i32, i32
  }
  func.func @transform_3(%arg0: i32) -> (i32, i32) {
    %c0_i32 = arith.constant 0 : i32
    %c0_i32_0 = arith.constant 0 : i32
    %c0_i32_1 = arith.constant 0 : i32
    return %c0_i32, %c0_i32_0 : i32, i32
  }
  func.func @transform_4(%arg0: i32) -> (i32, i32) {
    %c0_i32 = arith.constant 0 : i32
    %c0_i32_0 = arith.constant 0 : i32
    %c0_i32_1 = arith.constant 0 : i32
    return %c0_i32, %c0_i32_0 : i32, i32
  }
  func.func @transform_5(%arg0: i32) -> (i32, i32) {
    %c0_i32 = arith.constant 0 : i32
    %c0_i32_0 = arith.constant 0 : i32
    %c0_i32_1 = arith.constant 0 : i32
    return %c0_i32, %c0_i32_0 : i32, i32
  }
  func.func @transform_6(%arg0: i32) -> (i32, i32) {
    %c0_i32 = arith.constant 0 : i32
    %c0_i32_0 = arith.constant 0 : i32
    %c0_i32_1 = arith.constant 0 : i32
    return %c0_i32, %c0_i32_0 : i32, i32
  }
  func.func @transform_7(%arg0: i32) -> (i32, i32) {
    %c0_i32 = arith.constant 0 : i32
    %c0_i32_0 = arith.constant 0 : i32
    %c0_i32_1 = arith.constant 0 : i32
    return %c0_i32, %c0_i32_0 : i32, i32
  }
  func.func @transform_8(%arg0: i32) -> (i32, i32) {
    %c0_i32 = arith.constant 0 : i32
    %c0_i32_0 = arith.constant 0 : i32
    %c0_i32_1 = arith.constant 0 : i32
    return %c0_i32, %c0_i32_0 : i32, i32
  }
  func.func @transform_9(%arg0: i32) -> (i32, i32) {
    %c0_i32 = arith.constant 0 : i32
    %c0_i32_0 = arith.constant 0 : i32
    return %c0_i32, %arg0 : i32, i32
  }
}

</mosaic_0001>

<bundles_post_ra>
// kernel: tpu_custom_call.1
= control target key start
LH: loop header
LB: loop body
LE: loop exit
PB: predicated region body
PF: predicated region fallthrough
CT: control target
= control target key end

     0   :  { %vm85_vm0 = vcmask 1040384   ;;  %vm86_vm1 = vcmask 1041408   ;;  %v564_v2 = vmov 65535   ;;  %v565_v5 = vmov 0   ;;  %s708_s0 = inlined_call_operand.vmem [shape: f32[3,256], index: 0, kind: input, shape index: {}]   ;;  %s709_s1 = inlined_call_operand.vmem [shape: bf16[32,3], index: 1, kind: input, shape index: {}]   ;;  %s710_s2 = inlined_call_operand.vmem [shape: f32[32,1], index: 2, kind: input, shape index: {}]   ;;  %s711_s3 = inlined_call_operand.vmem [shape: bf16[32,32], index: 3, kind: input, shape index: {}]   ;;  %s712_s4 = inlined_call_operand.vmem [shape: f32[32,1], index: 4, kind: input, shape index: {}]   ;;  %s713_s5 = inlined_call_operand.vmem [shape: bf16[32,32], index: 5, kind: input, shape index: {}]   ;;  %s714_s6 = inlined_call_operand.vmem [shape: f32[32,1], index: 6, kind: input, shape index: {}]   ;;  %s715_s7 = inlined_call_operand.vmem [shape: bf16[3,32], index: 7, kind: input, shape index: {}]   ;;  %s716_s8 = inlined_call_operand.vmem [shape: f32[3,1], index: 8, kind: input, shape index: {}]   ;;  %s717_s9 = inlined_call_operand.hbm [shape: f32[3,256], index: 9, kind: output, shape index: {}]  }
   0x1   :  { %v34_v0 = vld [vmem:[%s708_s0] sm:$0x77]  ;;  %v87_v3 = vsel %vm85_vm0, 4294967295, %v564_v2  ;;  %127 = vmatprep.mubr.bf16.mxu0 %v565_v5  ;;  %475 = vset.pattern.permute.xlu0 %v565_v5  ;;  %v46_v10 = vld [vmem:[%s710_s2 + $0x10] sm:$0xff]  ;;  %v45_v12 = vld [vmem:[%s710_s2 + $0x8] sm:$0xff]  ;;  %vm78_vm2 = vcmask 23552  }
   0x2   :  { %v36_v1 = vcombine.high %v34_v0, %v34_v0  ;;  %v38_v4 = vpack.c.bf16 %v34_v0, %v34_v0  ;;  %v88_v6 = vsel %vm86_vm1, %v87_v3, 0  ;;  %476 = vset.pattern.permute.xlu1 %v565_v5  ;;  %237 = vmatprep.mubr.bf16.mxu1 %v565_v5  ;;  %v44_v8 = vld [vmem:[%s710_s2] sm:$0xff]  ;;  %v47_v13 = vld [vmem:[%s710_s2 + $0x18] sm:$0xff]  ;;  %v165_v16 = vld [vmem:[%s712_s4 + $0x8] sm:$0xff] }
   0x3   :  { %50 = vperm.xlu0 %475, %v44_v8   ;;  %60 = vperm.xlu1 %476, %v46_v10   ;;  %v478_v14 = vld [vmem:[%s709_s1] sm:$0xff]  }
   0x4   :  { %v39_v7 = vpack.c.bf16 %v36_v1, %v36_v1  ;;  %v90_v9 = vand.u32 %v88_v6, %v38_v4  ;;  %v164_v15 = vld [vmem:[%s712_s4] sm:$0xff] }
   0x6   :  { %v93_v11 = vand.u32 %v88_v6, %v39_v7 }
   0x7   :  { %55 = vperm.xlu0 %475, %v45_v12   ;;  %65 = vperm.xlu1 %476, %v47_v13  }
   0x8   :  { %95 = vmatprep.subr.bf16.mxu0 %v93_v11 }
   0x9   :  { %96 = vmatpush1.bf16.msra.mxu0 %v90_v9 }
   0xa   :  { %14 = vsyncpa [#allocation3], 0  ;;  %v166_v17 = vld [vmem:[%s712_s4 + $0x10] sm:$0xff]  ;;  %v167_v18 = vld [vmem:[%s712_s4 + $0x18] sm:$0xff]  ;;  %vm198_vm3 = vcmask 261120  }
   0xb   :  { %170 = vperm.xlu0 %475, %v164_v15   ;;  %175 = vperm.xlu1 %476, %v165_v16   ;;  %v479_v19 = vld [vmem:[%s709_s1 + $0x8] sm:$0xff]   ;;  %v274_v20 = vld [vmem:[%s714_s6] sm:$0xff]  ;;  %v276_v22 = vld [vmem:[%s714_s6 + $0x10] sm:$0xff] }
   0xc   :  { %461 = vmatmul.mubr.msk.bf16.vlgmr.msra.gmra.mrb[0].mxu0 %vm78_vm2, %v478_v14  ;;  %v275_v21 = vld [vmem:[%s714_s6 + $0x8] sm:$0xff]  ;;  %v277_v23 = vld [vmem:[%s714_s6 + $0x18] sm:$0xff]  ;;  %v380_v24 = vld [vmem:[%s716_s8] sm:$0x7] }
   0xd   :  { %137 = vmatprep.mubr.bf16.mxu0 %v565_v5  ;;  %v480_v57 = vld [vmem:[%s711_s3] sm:$0xff]   ;;  %v481_v58 = vld [vmem:[%s711_s3 + $0x8] sm:$0xff]  }
   0xf   :  { %180 = vperm.xlu0 %475, %v166_v17   ;;  %185 = vperm.xlu1 %476, %v167_v18  }
  0x13   :  { %280 = vperm.xlu0 %475, %v274_v20   ;;  %285 = vperm.xlu1 %476, %v275_v21  }
  0x14   :  { %462 = vmatmul.mubr.msk.bf16.gmra.mrb[4].mxu0 %vm78_vm2, %v479_v19 }
  0x15   :  { %346 = vmatprep.mubr.bf16.mxu0 %v565_v5 }
  0x17   :  { %290 = vperm.xlu0 %475, %v276_v22   ;;  %295 = vperm.xlu1 %476, %v277_v23  }
  0x1b   :  { %383 = vperm.xlu0 %475, %v380_v24  }
  0x82   :  { %v51_v25 = vpop.permute.xlu0 %50  ;;  %v61_v34 = vpop.permute.xlu1 %60 }
  0x86   :  { %v56_v29 = vpop.permute.xlu0 %55  ;;  %v66_v39 = vpop.permute.xlu1 %65 }
  0x8a   :  { %v171_v59 = vpop.permute.xlu0 %170  ;;  %v176_v63 = vpop.permute.xlu1 %175 }
  0x8e   :  { %v181_v6 = vpop.permute.xlu0 %180  ;;  %v186_v10 = vpop.permute.xlu1 %185 }
  0xdf   :  { %v129_v26 = vpop.f32.mrb[0].mxu0 }
  0xe0   :  { %v130_v27 = vadd.f32 %v129_v26, %v51_v25  ;;  %v131_v28 = vpop.f32.mrb[1].mxu0 }
  0xe1   :  { %v132_v30 = vadd.f32 %v131_v28, %v51_v25  ;;  %v133_v31 = vpop.f32.mrb[2].mxu0  ;;  %v482_v28 = vld [vmem:[%s713_s5] sm:$0xff]  }
  0xe2   :  { %484 = vtanh.f32 %v130_v27  ;;  %v134_v32 = vadd.f32 %v133_v31, %v56_v29  ;;  %v135_v33 = vpop.f32.mrb[3].mxu0 }
  0xe3   :  { %486 = vtanh.f32 %v132_v30  ;;  %v136_v35 = vadd.f32 %v135_v33, %v56_v29  ;;  %v483_v29 = vld [vmem:[%s713_s5 + $0x8] sm:$0xff]   ;;  %v281_v30 = vpop.permute.xlu0 %280 }
  0xe4   :  { %488 = vtanh.f32 %v134_v32 }
  0xe5   :  { %490 = vtanh.f32 %v136_v35 }
  0xe7   :  { %v139_v36 = vpop.f32.mrb[4].mxu0 }
  0xe8   :  { %v140_v37 = vadd.f32 %v139_v36, %v61_v34  ;;  %v141_v38 = vpop.f32.mrb[5].mxu0 }
  0xe9   :  { %v142_v40 = vadd.f32 %v141_v38, %v61_v34  ;;  %v143_v41 = vpop.f32.mrb[6].mxu0  ;;  %v286_v34 = vpop.permute.xlu1 %285 }
  0xea   :  { %492 = vtanh.f32 %v140_v37  ;;  %v144_v42 = vadd.f32 %v143_v41, %v66_v39  ;;  %v145_v43 = vpop.f32.mrb[7].mxu0 }
  0xeb   :  { %494 = vtanh.f32 %v142_v40  ;;  %v146_v44 = vadd.f32 %v145_v43, %v66_v39 }
  0xec   :  { %v485_v45 = vpop.eup %484  ;;  %496 = vtanh.f32 %v144_v42 }
  0xed   :  { %v487_v46 = vpop.eup %486  ;;  %498 = vtanh.f32 %v146_v44  ;;  %v296_v43 = vpop.permute.xlu1 %295 }
  0xee   :  { %v489_v47 = vpop.eup %488 }
  0xef   :  { %v491_v48 = vpop.eup %490  ;;  %v160_v49 = vpack.c.bf16 %v489_v47, %v485_v45 }
  0xf0   :  { %v161_v50 = vpack.c.bf16 %v491_v48, %v487_v46 }
  0xf2   :  { %205 = vmatprep.subr.bf16.mxu1 %v161_v50 }
  0xf3   :  { %206 = vmatpush1.bf16.msra.mxu1 %v160_v49 }
  0xf4   :  { %v493_v51 = vpop.eup %492 }
  0xf5   :  { %v495_v52 = vpop.eup %494 }
  0xf6   :  { %v497_v53 = vpop.eup %496 }
  0xf7   :  { %v499_v54 = vpop.eup %498  ;;  %v162_v55 = vpack.c.bf16 %v497_v53, %v493_v51 }
  0xf8   :  { %v163_v56 = vpack.c.bf16 %v499_v54, %v495_v52 }
  0xfa   :  { %207 = vmatprep.subr.bf16.mxu1 %v163_v56 }
  0xfb   :  { %208 = vmatpush1.bf16.msra.mxu1 %v162_v55 }
  0xfe   :  { %465 = vmatmul.mubr.msk.bf16.vlgmr.msra.gmra.mrb[0].mxu1 %vm198_vm3, %v480_v57 }
  0xff   :  { %247 = vmatprep.mubr.bf16.mxu1 %v565_v5 }
 0x106   :  { %466 = vmatmul.mubr.msk.bf16.gmra.mrb[4].mxu1 %vm198_vm3, %v481_v58 }
 0x107   :  { %421 = vmatprep.mubr.bf16.mxu1 %v565_v5 }
 0x1d1   :  { %v239_v60 = vpop.f32.mrb[0].mxu1 }
 0x1d2   :  { %v240_v61 = vadd.f32 %v239_v60, %v171_v59  ;;  %v241_v62 = vpop.f32.mrb[1].mxu1 }
 0x1d3   :  { %v242_v0 = vadd.f32 %v241_v62, %v171_v59  ;;  %v243_v1 = vpop.f32.mrb[2].mxu1 }
 0x1d4   :  { %500 = vtanh.f32 %v240_v61  ;;  %v244_v2 = vadd.f32 %v243_v1, %v176_v63  ;;  %v245_v3 = vpop.f32.mrb[3].mxu1  ;;  %v375_v61 = vld [vmem:[%s715_s7] sm:$0x3]  ;;  %s566_s7 = smov [#allocation2]  }
 0x1d5   :  { %502 = vtanh.f32 %v242_v0  ;;  %v246_v4 = vadd.f32 %v245_v3, %v176_v63  ;;  %s451_s21 = sshll.u32 %s566_s7, 4  ;;  %s452_s21 = int_to_ptr.vmem [resolvable:$true] %s451_s21 }
 0x1d6   :  { %504 = vtanh.f32 %v244_v2  ;;  %s540_s22 = scalar_lea.vmem %s452_s21, 128  ;;  %p545_p1 = scmp.lt.s32.totalorder %s452_s21, %s452_s21 }
 0x1d7   :  { %506 = vtanh.f32 %v246_v4  ;;  %p541_p0 = scmp.ne.s32.totalorder %s452_s21, %s540_s22  ;;  %p546_p2 = scmp.lt.s32.totalorder %s540_s22, %s540_s22 }
 0x1d9   :  { %v249_v7 = vpop.f32.mrb[4].mxu1  ;;  %p547_p3 = por %p546_p2, %p545_p1 }
 0x1da   :  { %v250_v8 = vadd.f32 %v249_v7, %v181_v6  ;;  %v251_v9 = vpop.f32.mrb[5].mxu1 }
 0x1db   :  { %v252_v11 = vadd.f32 %v251_v9, %v181_v6  ;;  %v253_v12 = vpop.f32.mrb[6].mxu1  ;;  %p548_p4 = pnand %p547_p3, %p541_p0 }
 0x1dc   :  { %508 = vtanh.f32 %v250_v8  ;;  %v254_v13 = vadd.f32 %v253_v12, %v186_v10  ;;  %v255_v14 = vpop.f32.mrb[7].mxu1 }
 0x1dd   :  { %510 = vtanh.f32 %v252_v11  ;;  %v256_v15 = vadd.f32 %v255_v14, %v186_v10 }
 0x1de   :  { %v501_v16 = vpop.eup %500  ;;  %512 = vtanh.f32 %v254_v13 }
 0x1df   :  { %v503_v17 = vpop.eup %502  ;;  %514 = vtanh.f32 %v256_v15 }
 0x1e0   :  { %v505_v18 = vpop.eup %504 }
 0x1e1   :  { %v507_v19 = vpop.eup %506  ;;  %v270_v20 = vpack.c.bf16 %v505_v18, %v501_v16 }
 0x1e2   :  { %v271_v21 = vpack.c.bf16 %v507_v19, %v503_v17 }
 0x1e4   :  { %314 = vmatprep.subr.bf16.mxu0 %v271_v21 }
 0x1e5   :  { %315 = vmatpush1.bf16.msra.mxu0 %v270_v20 }
 0x1e6   :  { %v509_v22 = vpop.eup %508 }
 0x1e7   :  { %v511_v23 = vpop.eup %510 }
 0x1e8   :  { %v513_v24 = vpop.eup %512 }
 0x1e9   :  { %v515_v25 = vpop.eup %514  ;;  %v272_v26 = vpack.c.bf16 %v513_v24, %v509_v22 }
 0x1ea   :  { %v273_v27 = vpack.c.bf16 %v515_v25, %v511_v23 }
 0x1ec   :  { %316 = vmatprep.subr.bf16.mxu0 %v273_v27 }
 0x1ed   :  { %317 = vmatpush1.bf16.msra.mxu0 %v272_v26 }
 0x1f0   :  { %469 = vmatmul.mubr.msk.bf16.vlgmr.msra.gmra.mrb[8].mxu0 %vm198_vm3, %v482_v28 }
 0x1f1   :  { %356 = vmatprep.mubr.bf16.mxu0 %v565_v5  ;;  %v291_v5 = vpop.permute.xlu0 %290 }
 0x1f5   :  { %v384_v62 = vpop.permute.xlu0 %383 }
 0x1f8   :  { %470 = vmatmul.mubr.msk.bf16.gmra.mrb[12].mxu0 %vm198_vm3, %v483_v29 }
 0x2c3   :  { %v348_v31 = vpop.f32.mrb[8].mxu0 }
 0x2c4   :  { %v349_v32 = vadd.f32 %v348_v31, %v281_v30  ;;  %v350_v33 = vpop.f32.mrb[9].mxu0 }
 0x2c5   :  { %v351_v35 = vadd.f32 %v350_v33, %v281_v30  ;;  %v352_v36 = vpop.f32.mrb[10].mxu0 }
 0x2c6   :  { %516 = vtanh.f32 %v349_v32  ;;  %v353_v37 = vadd.f32 %v352_v36, %v286_v34  ;;  %v354_v38 = vpop.f32.mrb[11].mxu0 }
 0x2c7   :  { %518 = vtanh.f32 %v351_v35  ;;  %v355_v39 = vadd.f32 %v354_v38, %v286_v34 }
 0x2c8   :  { %520 = vtanh.f32 %v353_v37 }
 0x2c9   :  { %522 = vtanh.f32 %v355_v39 }
 0x2cb   :  { %v358_v40 = vpop.f32.mrb[12].mxu0 }
 0x2cc   :  { %v359_v41 = vadd.f32 %v358_v40, %v291_v5  ;;  %v360_v42 = vpop.f32.mrb[13].mxu0 }
 0x2cd   :  { %v361_v44 = vadd.f32 %v360_v42, %v291_v5  ;;  %v362_v45 = vpop.f32.mrb[14].mxu0 }
 0x2ce   :  { %524 = vtanh.f32 %v359_v41  ;;  %v363_v46 = vadd.f32 %v362_v45, %v296_v43  ;;  %v364_v47 = vpop.f32.mrb[15].mxu0 }
 0x2cf   :  { %526 = vtanh.f32 %v361_v44  ;;  %v365_v48 = vadd.f32 %v364_v47, %v296_v43 }
 0x2d0   :  { %v517_v49 = vpop.eup %516  ;;  %528 = vtanh.f32 %v363_v46 }
 0x2d1   :  { %v519_v50 = vpop.eup %518  ;;  %530 = vtanh.f32 %v365_v48 }
 0x2d2   :  { %v521_v51 = vpop.eup %520 }
 0x2d3   :  { %v523_v52 = vpop.eup %522  ;;  %v376_v53 = vpack.c.bf16 %v521_v51, %v517_v49 }
 0x2d4   :  { %v377_v54 = vpack.c.bf16 %v523_v52, %v519_v50 }
 0x2d6   :  { %389 = vmatprep.subr.bf16.mxu1 %v377_v54 }
 0x2d7   :  { %390 = vmatpush1.bf16.msra.mxu1 %v376_v53 }
 0x2d8   :  { %v525_v55 = vpop.eup %524 }
 0x2d9   :  { %v527_v56 = vpop.eup %526 }
 0x2da   :  { %v529_v57 = vpop.eup %528 }
 0x2db   :  { %v531_v58 = vpop.eup %530  ;;  %v378_v59 = vpack.c.bf16 %v529_v57, %v525_v55 }
 0x2dc   :  { %v379_v60 = vpack.c.bf16 %v531_v58, %v527_v56 }
 0x2de   :  { %391 = vmatprep.subr.bf16.mxu1 %v379_v60 }
 0x2df   :  { %392 = vmatpush1.bf16.msra.mxu1 %v378_v59 }
 0x2e2   :  { %471 = vmatmul.mubr.msk.bf16.vlgmr.msra.gmra.mrb[8].mxu1 %vm198_vm3, %v375_v61 }
 0x3b5   :  { %v423_v63 = vpop.f32.mrb[8].mxu1 }
 0x3b6   :  { %v424_v0 = vadd.f32 %v423_v63, %v384_v62  ;;  %v425_v1 = vpop.f32.mrb[9].mxu1 }
 0x3b7   :  { %v426_v2 = vadd.f32 %v425_v1, %v384_v62  ;;  %v427_v3 = vpop.f32.mrb[10].mxu1 }
 0x3b8   :  { %v430_v4 = vsub.f32 0.0, %v424_v0  ;;  %v428_v6 = vpop.f32.mrb[11].mxu1 }
 0x3b9   :  { %v431_v7 = vsub.f32 0.0, %v426_v2 }
 0x3ba   :  { %v432_v8 = vmul.f32 1.442695, %v430_v4 }
 0x3bb   :  { %v434_v9 = vmul.f32 1.442695, %v431_v7 }
 0x3bc   :  { %532 = vpow2.f32 %v432_v8 }
 0x3bd   :  { %534 = vpow2.f32 %v434_v9 }
 0x3c6   :  { %v533_v10 = vpop.eup %532 }
 0x3c7   :  { %v535_v11 = vpop.eup %534  ;;  %v436_v12 = vadd.f32 1.0, %v533_v10 }
 0x3c8   :  { %v437_v13 = vadd.f32 1.0, %v535_v11 }
 0x3c9   :  { %536 = vrcp.f32 %v436_v12 }
 0x3ca   :  { %538 = vrcp.f32 %v437_v13 }
 0x3d3   :  { %v537_v14 = vpop.eup %536 }
 0x3d4   :  { %v539_v15 = vpop.eup %538 }
 0x3d5   :  { %v442_v16 = vcombine.low %v537_v14, %v539_v15 }
 0x3d7   :  { %444 = vst [vmem:[#allocation2] sm:$0x77] %v442_v16 }
 0x3d8   :  { %551 = shalt.err (!%p548_p4)
}
 0x3d9   :  { %s552_s24 = scalar_lea.hbm %s717_s9, 128 }
 0x3da   :  { %p553_p5 = scmp.ne.s32.totalorder %s717_s9, %s552_s24  ;;  %p556_p6 = scmp.lt.u32.totalorder %s552_s24, %s717_s9 }
 0x3dc   :  { %p558_p7 = pnand %p556_p6, %p553_p5 }
 0x3de   :  { %561 = shalt.err (!%p558_p7)
}
 0x3df   :  { %454 = dma.vmem_to_hbm [thread:$0]  %s452_s21, 128, %s717_s9, [#allocation3]  }
 0x3e0   :  { %562 = dma.done.wait [#allocation3], 128  }
 0x3e1   :  { %563 = vsyncadd [#allocation3], 4294967168 }
 0x3e2   :  { %458 = vsyncpa [#allocation3], 1 }

</bundles_post_ra>
